<compile_context>
chip_gen: v6e
topology: v6e:2x2x1
jax: 0.10.0
libtpu: 0.0.40
codegen_flags: <defaults>
</compile_context>

<pallas_src>
import functools
import math

import jax
import jax.numpy as jnp
from jax import lax
from jax.experimental import pallas as pl
from jax.experimental.pallas import tpu as pltpu


# ------------------------------- helpers -----------------------------------

def _cparams(semantics):
    # 48 MiB keeps the largest (fused-FFN) tiles safely inside v7x's 64 MiB VMEM;
    # on v5e/v6e (128 MiB) this could be raised further, but it is safe everywhere.
    return pltpu.CompilerParams(
        dimension_semantics=semantics,
        vmem_limit_bytes=48 * 1024 * 1024,
    )


def _pick_row_tile(m, preferred=512):
    """Pick a row-tile that divides m and respects the (8, 128) layout rule."""
    if m <= preferred:
        return m                      # full extent -> always legal
    for t in (preferred, 256, 128, 64, 32, 16, 8):
        if m % t == 0:
            return t
    return m                          # fallback: single block


def _heads_per_group(n_heads, head_dim):
    """Smallest head-group whose lane width (g*head_dim) is a multiple of 128."""
    for g in range(1, n_heads):
        if n_heads % g == 0 and (g * head_dim) % 128 == 0:
            return g
    return n_heads                    # fall back to all heads (full-extent block)


# ----------------------------- Pallas kernels ------------------------------

def _layernorm_kernel(x_ref, g_ref, b_ref, o_ref, *, eps):
    x = x_ref[...]
    mu = jnp.mean(x, axis=-1, keepdims=True)
    var = jnp.mean(jnp.square(x - mu), axis=-1, keepdims=True)
    o_ref[...] = (x - mu) * lax.rsqrt(var + eps) * g_ref[...] + b_ref[...]


def layernorm(x, gamma, beta, eps=1e-12, tm_target=512):
    M, H = x.shape
    tm = _pick_row_tile(M, tm_target)
    return pl.pallas_call(
        functools.partial(_layernorm_kernel, eps=eps),
        grid=(M // tm,),
        out_shape=jax.ShapeDtypeStruct((M, H), jnp.float32),
        in_specs=[
            pl.BlockSpec((tm, H), lambda i: (i, 0)),
            pl.BlockSpec((1, H), lambda i: (0, 0)),
            pl.BlockSpec((1, H), lambda i: (0, 0)),
        ],
        out_specs=pl.BlockSpec((tm, H), lambda i: (i, 0)),
        compiler_params=_cparams(("parallel",)),
    )(x, gamma.reshape(1, H), beta.reshape(1, H))


def _qkv_attn_kernel(x_ref, w_ref, b_ref, bias_ref, o_ref, *, heads, dh):
    """Fused QKV projection + softmax attention for one (batch, head-group) step.

    x_ref:    (S, H)            activations for one batch element
    w_ref:    (1, H, 3*Gd)      bf16 grouped [Q|K|V] weights (scale folded into Q)
    b_ref:    (1, 1, 3*Gd)      f32 grouped [Q|K|V] biases (scale folded into Q)
    bias_ref: (1, 1, S)         additive key mask for this batch element
    o_ref:    (S, Gd)           bf16 context for this head-group
    """
    gd = heads * dh
    x = x_ref[...].astype(jnp.bfloat16)
    qkv = jnp.dot(x, w_ref[0], preferred_element_type=jnp.float32) + b_ref[0]  # (S, 3Gd)
    bias = bias_ref[0]                                                          # (1, S)
    # TODO(synk): for long sequences (S >= ~2048 on v7x), tile the KV axis
    # (flash-style) instead of materializing the full (S, S) scores per head.
    parts = []
    for h in range(heads):
        q = qkv[:, h * dh:(h + 1) * dh].astype(jnp.bfloat16)
        k = qkv[:, gd + h * dh:gd + (h + 1) * dh].astype(jnp.bfloat16)
        v = qkv[:, 2 * gd + h * dh:2 * gd + (h + 1) * dh].astype(jnp.bfloat16)
        s = lax.dot_general(q, k, (((1,), (1,)), ((), ())),
                            preferred_element_type=jnp.float32)
        s = s + bias                                   # broadcast over query rows
        m = jnp.max(s, axis=-1, keepdims=True)
        p = jnp.exp(s - m)
        p = p * pl.reciprocal(jnp.sum(p, axis=-1, keepdims=True), approx=True)
        parts.append(jnp.dot(p.astype(jnp.bfloat16), v,
                             preferred_element_type=jnp.float32))
    ctx = parts[0] if heads == 1 else jnp.concatenate(parts, axis=-1)
    o_ref[...] = ctx.astype(o_ref.dtype)


def qkv_attention(x, wqkv_g, bqkv_g, bias, *, batch, seq, heads_per_group, head_dim):
    """x: (M, H) f32; wqkv_g: (G, H, 3*Gd) bf16; bqkv_g: (G, 1, 3*Gd) f32;
    bias: (B, 1, S) f32 additive key mask.  Returns (M, H) bf16 context."""
    M, H = x.shape
    n_groups = wqkv_g.shape[0]
    gd = heads_per_group * head_dim
    return pl.pallas_call(
        functools.partial(_qkv_attn_kernel, heads=heads_per_group, dh=head_dim),
        grid=(batch, n_groups),
        out_shape=jax.ShapeDtypeStruct((M, H), jnp.bfloat16),
        in_specs=[
            pl.BlockSpec((seq, H), lambda b, g: (b, 0)),        # x stays resident over g
            pl.BlockSpec((1, H, 3 * gd), lambda b, g: (g, 0, 0)),
            pl.BlockSpec((1, 1, 3 * gd), lambda b, g: (g, 0, 0)),
            pl.BlockSpec((1, 1, seq), lambda b, g: (b, 0, 0)),
        ],
        out_specs=pl.BlockSpec((seq, gd), lambda b, g: (b, g)),
        compiler_params=_cparams(("parallel", "parallel")),
    )(x, wqkv_g, bqkv_g, bias)


def _dense_add_ln_kernel(x_ref, w_ref, b_ref, res_ref, g_ref, bt_ref, o_ref, *, eps):
    # (x @ w + b) + residual, then LayerNorm — one pass over the row tile.
    y = jnp.dot(x_ref[...].astype(jnp.bfloat16), w_ref[...],
                preferred_element_type=jnp.float32) + b_ref[...]
    y = y + res_ref[...]
    mu = jnp.mean(y, axis=-1, keepdims=True)
    var = jnp.mean(jnp.square(y - mu), axis=-1, keepdims=True)
    o_ref[...] = (y - mu) * lax.rsqrt(var + eps) * g_ref[...] + bt_ref[...]


def dense_add_layernorm(x, w, b, residual, gamma, beta, eps=1e-12, tm_target=512):
    M, K = x.shape
    N = w.shape[1]
    tm = _pick_row_tile(M, tm_target)
    return pl.pallas_call(
        functools.partial(_dense_add_ln_kernel, eps=eps),
        grid=(M // tm,),
        out_shape=jax.ShapeDtypeStruct((M, N), jnp.float32),
        in_specs=[
            pl.BlockSpec((tm, K), lambda i: (i, 0)),
            pl.BlockSpec((K, N), lambda i: (0, 0)),
            pl.BlockSpec((1, N), lambda i: (0, 0)),
            pl.BlockSpec((tm, N), lambda i: (i, 0)),
            pl.BlockSpec((1, N), lambda i: (0, 0)),
            pl.BlockSpec((1, N), lambda i: (0, 0)),
        ],
        out_specs=pl.BlockSpec((tm, N), lambda i: (i, 0)),
        compiler_params=_cparams(("parallel",)),
    )(x, w.astype(jnp.bfloat16), b.reshape(1, N), residual,
      gamma.reshape(1, N), beta.reshape(1, N))


def _ffn_kernel(x_ref, w1_ref, b1_ref, w2_ref, b2_ref, g_ref, bt_ref, o_ref, *, eps):
    # Fused FFN: the (tm, intermediate) activation lives only in VMEM/vregs.
    x = x_ref[...]
    h = jnp.dot(x.astype(jnp.bfloat16), w1_ref[...],
                preferred_element_type=jnp.float32) + b1_ref[...]
    # TODO(synk): HF BERT uses exact erf-GELU; tanh approximation kept for
    # guaranteed Mosaic lowering (numerical difference is tiny).
    h = jax.nn.gelu(h, approximate=True)
    y = jnp.dot(h.astype(jnp.bfloat16), w2_ref[...],
                preferred_element_type=jnp.float32) + b2_ref[...]
    y = y + x
    mu = jnp.mean(y, axis=-1, keepdims=True)
    var = jnp.mean(jnp.square(y - mu), axis=-1, keepdims=True)
    o_ref[...] = (y - mu) * lax.rsqrt(var + eps) * g_ref[...] + bt_ref[...]


def ffn_add_layernorm(x, w1, b1, w2, b2, gamma, beta, eps=1e-12, tm_target=512):
    M, H = x.shape
    I = w1.shape[1]
    tm = _pick_row_tile(M, tm_target)
    return pl.pallas_call(
        functools.partial(_ffn_kernel, eps=eps),
        grid=(M // tm,),
        out_shape=jax.ShapeDtypeStruct((M, H), jnp.float32),
        in_specs=[
            pl.BlockSpec((tm, H), lambda i: (i, 0)),
            pl.BlockSpec((H, I), lambda i: (0, 0)),
            pl.BlockSpec((1, I), lambda i: (0, 0)),
            pl.BlockSpec((I, H), lambda i: (0, 0)),
            pl.BlockSpec((1, H), lambda i: (0, 0)),
            pl.BlockSpec((1, H), lambda i: (0, 0)),
            pl.BlockSpec((1, H), lambda i: (0, 0)),
        ],
        out_specs=pl.BlockSpec((tm, H), lambda i: (i, 0)),
        compiler_params=_cparams(("parallel",)),
    )(x, w1.astype(jnp.bfloat16), b1.reshape(1, I), w2.astype(jnp.bfloat16),
      b2.reshape(1, H), gamma.reshape(1, H), beta.reshape(1, H))


def _head_loss_kernel(cls_ref, w_ref, b_ref, y_ref, m_ref, logits_ref, loss_ref,
                      *, inv_b):
    # Classifier heads (padded to 128 lanes) + stable BCE-with-logits loss.
    z = jnp.dot(cls_ref[...].astype(jnp.bfloat16), w_ref[...],
                preferred_element_type=jnp.float32) + b_ref[...]
    logits_ref[...] = z
    y = y_ref[...]
    per = jnp.maximum(z, 0.0) - z * y + jnp.log(1.0 + jnp.exp(-jnp.abs(z)))
    per = per * m_ref[...]                                     # zero out padded lanes
    per_label = jnp.sum(per, axis=0, keepdims=True) * inv_b    # mean over batch
    loss_ref[...] = jnp.sum(per_label, axis=1, keepdims=True)  # sum over heads


def cls_head_and_loss(cls, w_pad, b_pad, labels_pad, mask_pad):
    B, H = cls.shape
    Lp = w_pad.shape[1]
    logits_pad, loss = pl.pallas_call(
        functools.partial(_head_loss_kernel, inv_b=1.0 / B),
        grid=(1,),
        out_shape=(jax.ShapeDtypeStruct((B, Lp), jnp.float32),
                   jax.ShapeDtypeStruct((1, 1), jnp.float32)),
        in_specs=[
            pl.BlockSpec((B, H), lambda i: (0, 0)),
            pl.BlockSpec((H, Lp), lambda i: (0, 0)),
            pl.BlockSpec((1, Lp), lambda i: (0, 0)),
            pl.BlockSpec((B, Lp), lambda i: (0, 0)),
            pl.BlockSpec((1, Lp), lambda i: (0, 0)),
        ],
        out_specs=(pl.BlockSpec((B, Lp), lambda i: (0, 0)),
                   pl.BlockSpec((1, 1), lambda i: (0, 0))),
        compiler_params=_cparams(("arbitrary",)),
    )(cls, w_pad.astype(jnp.bfloat16), b_pad.reshape(1, Lp),
      labels_pad, mask_pad.reshape(1, Lp))
    return logits_pad, loss[0, 0]


# ----------------------------- parameter init ------------------------------

def init_params(key, *, vocab_size, max_pos, type_vocab, hidden, intermediate,
                n_layers, n_heads, n_label):
    dh = hidden // n_heads
    hpg = _heads_per_group(n_heads, dh)        # heads per attention grid step
    n_groups = n_heads // hpg
    gd = hpg * dh
    scale = 1.0 / math.sqrt(dh)

    ks = iter(jax.random.split(key, 4 + 6 * n_layers))

    def w(shape):
        return 0.02 * jax.random.normal(next(ks), shape, dtype=jnp.float32)

    Lp = ((n_label + 127) // 128) * 128          # lane-dense classifier width
    clf_core = w((hidden, n_label))              # n_label stacked Linear(hidden, 1)
    clf_w = jnp.zeros((hidden, Lp), jnp.float32).at[:, :n_label].set(clf_core)

    params = {
        "hidden": hidden,
        "n_heads": n_heads,
        "head_dim": dh,
        "heads_per_group": hpg,
        "n_label": n_label,
        "word_emb": w((vocab_size, hidden)),
        "pos_emb": w((max_pos, hidden)),
        "type_emb": w((type_vocab, hidden)),
        "emb_ln_g": jnp.ones((hidden,), jnp.float32),
        "emb_ln_b": jnp.zeros((hidden,), jnp.float32),
        "clf_w": clf_w.astype(jnp.bfloat16),
        "clf_b": jnp.zeros((Lp,), jnp.float32),
        "clf_mask": jnp.zeros((Lp,), jnp.float32).at[:n_label].set(1.0),
        "layers": [],
    }

    def group_w(m):   # (H, H) head-interleaved cols -> (n_groups, H, gd)
        return m.reshape(hidden, n_groups, gd).transpose(1, 0, 2)

    def group_b(b):   # (H,) -> (n_groups, 1, gd)
        return b.reshape(n_groups, 1, gd)

    for _ in range(n_layers):
        wq, wk, wv = w((hidden, hidden)), w((hidden, hidden)), w((hidden, hidden))
        bq = jnp.zeros((hidden,), jnp.float32)
        bk = jnp.zeros((hidden,), jnp.float32)
        bv = jnp.zeros((hidden,), jnp.float32)
        # Fold the 1/sqrt(head_dim) softmax scale into the Q weight/bias columns
        # (this is where a checkpoint's Q weights would also be pre-scaled).
        wqkv_g = jnp.concatenate(
            [group_w(wq * scale), group_w(wk), group_w(wv)], axis=-1)   # (G, H, 3gd)
        bqkv_g = jnp.concatenate(
            [group_b(bq * scale), group_b(bk), group_b(bv)], axis=-1)   # (G, 1, 3gd)
        params["layers"].append({
            "wqkv_g": wqkv_g.astype(jnp.bfloat16),
            "bqkv_g": bqkv_g.astype(jnp.float32),
            "wo": w((hidden, hidden)).astype(jnp.bfloat16),
            "bo": jnp.zeros((hidden,), jnp.float32),
            "ln1_g": jnp.ones((hidden,), jnp.float32),
            "ln1_b": jnp.zeros((hidden,), jnp.float32),
            "w1": w((hidden, intermediate)).astype(jnp.bfloat16),
            "b1": jnp.zeros((intermediate,), jnp.float32),
            "w2": w((intermediate, hidden)).astype(jnp.bfloat16),
            "b2": jnp.zeros((hidden,), jnp.float32),
            "ln2_g": jnp.ones((hidden,), jnp.float32),
            "ln2_b": jnp.zeros((hidden,), jnp.float32),
        })
    return params


# ------------------------------- forward pass -------------------------------

def bin_bert_forward(params, input_ids, attention_mask=None, token_type_ids=None,
                     position_ids=None, label=None):
    B, S = input_ids.shape
    H = params["hidden"]
    dh = params["head_dim"]
    hpg = params["heads_per_group"]
    n_label = params["n_label"]
    M = B * S

    if attention_mask is None:
        attention_mask = jnp.ones((B, S), jnp.float32)
    if token_type_ids is None:
        token_type_ids = jnp.zeros((B, S), jnp.int32)
    if position_ids is None:
        position_ids = jnp.broadcast_to(jnp.arange(S, dtype=jnp.int32)[None, :], (B, S))

    # --- embeddings (gathers are glue JAX; normalization is a Pallas kernel) ---
    emb = (jnp.take(params["word_emb"], input_ids, axis=0)
           + jnp.take(params["pos_emb"], position_ids, axis=0)
           + jnp.take(params["type_emb"], token_type_ids, axis=0))
    x = emb.reshape(M, H).astype(jnp.float32)
    x = layernorm(x, params["emb_ln_g"], params["emb_ln_b"])
    # dropout(0.1) -> identity (eval mode)

    # Dense additive key-mask bias: (B, 1, S); broadcast over heads inside kernel.
    bias = ((1.0 - attention_mask.astype(jnp.float32)) * -1e9).reshape(B, 1, S)

    for layer in params["layers"]:
        # Fused QKV projection + multi-head attention; bf16 context (M, H).
        ctx = qkv_attention(x, layer["wqkv_g"], layer["bqkv_g"], bias,
                            batch=B, seq=S, heads_per_group=hpg, head_dim=dh)
        x = dense_add_layernorm(ctx, layer["wo"], layer["bo"],
                                x, layer["ln1_g"], layer["ln1_b"])
        x = ffn_add_layernorm(x, layer["w1"], layer["b1"],
                              layer["w2"], layer["b2"],
                              layer["ln2_g"], layer["ln2_b"])

    # last_hidden_state[:, 0, :]  (CLS token), dropout (identity, eval)
    cls = x.reshape(B, S, H)[:, 0, :]                                      # (B, H)

    if label is not None:
        assert len(label) == n_label
        labels = jnp.stack([l.astype(jnp.float32) for l in label], axis=1)  # (B, nL)
    else:
        labels = jnp.zeros((B, n_label), jnp.float32)
    Lp = params["clf_w"].shape[1]
    labels_pad = jnp.zeros((B, Lp), jnp.float32).at[:, :n_label].set(labels)

    logits_pad, loss_val = cls_head_and_loss(cls, params["clf_w"], params["clf_b"],
                                             labels_pad, params["clf_mask"])
    logits_mat = logits_pad[:, :n_label]
    logits = [logits_mat[:, i] for i in range(n_label)]                    # list of (B,)
    loss = loss_val if label is not None else None
    return loss, logits


# ---------------------------------- main ------------------------------------

if __name__ == "__main__":
    # small config consistent with the module's forward
    VOCAB = 50
    N_LABEL = 3
    HIDDEN = 32
    N_HEADS = 4
    INTER = 64
    N_LAYERS = 2
    MAX_POS = 16
    TYPE_VOCAB = 2
    B, S = 2, 8

    key = jax.random.PRNGKey(0)
    k_param, k_ids, k_lab = jax.random.split(key, 3)

    params = init_params(k_param, vocab_size=VOCAB, max_pos=MAX_POS,
                         type_vocab=TYPE_VOCAB, hidden=HIDDEN,
                         intermediate=INTER, n_layers=N_LAYERS,
                         n_heads=N_HEADS, n_label=N_LABEL)

    input_ids = jax.random.randint(k_ids, (B, S), 0, VOCAB, dtype=jnp.int32)
    attention_mask = jnp.ones((B, S), jnp.float32).at[1, -1].set(0.0)
    token_type_ids = jnp.zeros((B, S), jnp.int32)
    labels = [jax.random.bernoulli(jax.random.fold_in(k_lab, i), 0.5, (B,))
              .astype(jnp.float32) for i in range(N_LABEL)]

    loss, logits = bin_bert_forward(params, input_ids,
                                    attention_mask=attention_mask,
                                    token_type_ids=token_type_ids,
                                    label=labels)
    jax.block_until_ready(loss)
    for lg in logits:
        jax.block_until_ready(lg)
    print("KERNEL_OK")
</pallas_src>

<mosaic_0001>
module attributes {stable_mosaic.version = 11 : i64} {
  func.func @_layernorm_kernel(%arg0: i32, %arg1: memref<16x32xf32, #tpu.memory_space<vmem>>, %arg2: memref<1x32xf32, #tpu.memory_space<vmem>>, %arg3: memref<1x32xf32, #tpu.memory_space<vmem>>, %arg4: memref<16x32xf32, #tpu.memory_space<vmem>>) attributes {dimension_semantics = [#tpu.dimension_semantics<parallel>], iteration_bounds = array<i64: 1>, scalar_prefetch = 0 : i64, scratch_operands = 0 : i64, tpu.core_type = #tpu.core_type<tc>, window_params = [{transform_indices = @transform_0, window_bounds = array<i64: 16, 32>}, {pipeline_mode = #tpu.pipeline_mode<synchronous>, transform_indices = @transform_1, window_bounds = array<i64: 1, 32>}, {pipeline_mode = #tpu.pipeline_mode<synchronous>, transform_indices = @transform_2, window_bounds = array<i64: 1, 32>}, {transform_indices = @transform_3, window_bounds = array<i64: 16, 32>}]} {
    %c0 = arith.constant 0 : index
    %c0_0 = arith.constant 0 : index
    %0 = vector.load %arg1[%c0, %c0_0] : memref<16x32xf32, #tpu.memory_space<vmem>>, vector<16x32xf32>
    %cst = arith.constant dense<0.000000e+00> : vector<16xf32>
    %1 = vector.multi_reduction <add>, %0, %cst [1] : vector<16x32xf32> to vector<16xf32>
    %2 = vector.shape_cast %1 : vector<16xf32> to vector<16x1xf32>
    %cst_1 = arith.constant 3.200000e+01 : f32
    %3 = vector.broadcast %cst_1 : f32 to vector<16x1xf32>
    %4 = arith.divf %2, %3 : vector<16x1xf32>
    %5 = vector.broadcast %4 : vector<16x1xf32> to vector<16x32xf32>
    %6 = arith.subf %0, %5 : vector<16x32xf32>
    %7 = arith.mulf %6, %6 : vector<16x32xf32>
    %cst_2 = arith.constant dense<0.000000e+00> : vector<16xf32>
    %8 = vector.multi_reduction <add>, %7, %cst_2 [1] : vector<16x32xf32> to vector<16xf32>
    %9 = vector.shape_cast %8 : vector<16xf32> to vector<16x1xf32>
    %cst_3 = arith.constant 3.200000e+01 : f32
    %10 = vector.broadcast %cst_3 : f32 to vector<16x1xf32>
    %11 = arith.divf %9, %10 : vector<16x1xf32>
    %12 = vector.broadcast %4 : vector<16x1xf32> to vector<16x32xf32>
    %13 = arith.subf %0, %12 : vector<16x32xf32>
    %cst_4 = arith.constant 9.99999996E-13 : f32
    %14 = vector.broadcast %cst_4 : f32 to vector<16x1xf32>
    %15 = arith.addf %11, %14 : vector<16x1xf32>
    %16 = math.rsqrt %15 : vector<16x1xf32>
    %17 = vector.broadcast %16 : vector<16x1xf32> to vector<16x32xf32>
    %18 = arith.mulf %13, %17 : vector<16x32xf32>
    %c0_5 = arith.constant 0 : index
    %c0_6 = arith.constant 0 : index
    %19 = vector.load %arg2[%c0_5, %c0_6] : memref<1x32xf32, #tpu.memory_space<vmem>>, vector<1x32xf32>
    %20 = vector.broadcast %19 : vector<1x32xf32> to vector<16x32xf32>
    %21 = arith.mulf %18, %20 : vector<16x32xf32>
    %c0_7 = arith.constant 0 : index
    %c0_8 = arith.constant 0 : index
    %22 = vector.load %arg3[%c0_7, %c0_8] : memref<1x32xf32, #tpu.memory_space<vmem>>, vector<1x32xf32>
    %23 = vector.broadcast %22 : vector<1x32xf32> to vector<16x32xf32>
    %24 = arith.addf %21, %23 : vector<16x32xf32>
    %c0_9 = arith.constant 0 : index
    %c0_10 = arith.constant 0 : index
    %25 = vector.load %arg4[%c0_9, %c0_10] : memref<16x32xf32, #tpu.memory_space<vmem>>, vector<16x32xf32>
    tpu.vector_store %arg4[%c0_9, %c0_10], %24 {strides = array<i32>} : memref<16x32xf32, #tpu.memory_space<vmem>>, vector<16x32xf32>,
    return
  }
  func.func @transform_0(%arg0: i32) -> (i32, i32) {
    %c0_i32 = arith.constant 0 : i32
    %c0_i32_0 = arith.constant 0 : i32
    return %arg0, %c0_i32 : i32, i32
  }
  func.func @transform_1(%arg0: i32) -> (i32, i32) {
    %c0_i32 = arith.constant 0 : i32
    %c0_i32_0 = arith.constant 0 : i32
    %c0_i32_1 = arith.constant 0 : i32
    return %c0_i32, %c0_i32_0 : i32, i32
  }
  func.func @transform_2(%arg0: i32) -> (i32, i32) {
    %c0_i32 = arith.constant 0 : i32
    %c0_i32_0 = arith.constant 0 : i32
    %c0_i32_1 = arith.constant 0 : i32
    return %c0_i32, %c0_i32_0 : i32, i32
  }
  func.func @transform_3(%arg0: i32) -> (i32, i32) {
    %c0_i32 = arith.constant 0 : i32
    %c0_i32_0 = arith.constant 0 : i32
    return %arg0, %c0_i32 : i32, i32
  }
}

</mosaic_0001>

<bundles_post_ra>
// kernel: tpu_custom_call.1
= control target key start
LH: loop header
LB: loop body
LE: loop exit
PB: predicated region body
PF: predicated region fallthrough
CT: control target
= control target key end

     0   :  { %8 = vsyncpa [#allocation3], 0  ;;  %s198_s0 = inlined_call_operand.hbm [shape: f32[16,32], index: 0, kind: input, shape index: {}]   ;;  %s199_s1 = inlined_call_operand.vmem [shape: f32[1,32], index: 1, kind: input, shape index: {}]   ;;  %s200_s2 = inlined_call_operand.vmem [shape: f32[1,32], index: 2, kind: input, shape index: {}]   ;;  %s201_s3 = inlined_call_operand.hbm [shape: f32[16,32], index: 3, kind: output, shape index: {}]  }
   0x1   :  { %9 = vsyncpa [#allocation4], 0  ;;  %s150_s12 = smov [#allocation2]  }
   0x2   :  { %s15_s13 = sshll.u32 %s150_s12, 4  ;;  %s16_s13 = int_to_ptr.vmem [resolvable:$true] %s15_s13 }
   0x3   :  { %s114_s14 = scalar_lea.vmem %s16_s13, 256  ;;  %p119_p1 = scmp.lt.s32.totalorder %s16_s13, %s16_s13 }
   0x4   :  { %p115_p0 = scmp.ne.s32.totalorder %s16_s13, %s114_s14  ;;  %p120_p2 = scmp.lt.s32.totalorder %s114_s14, %s114_s14 }
   0x6   :  { %p121_p3 = por %p120_p2, %p119_p1 }
   0x8   :  { %p122_p4 = pnand %p121_p3, %p115_p0 }
   0xa   :  { %125 = shalt.err (!%p122_p4)
}
   0xb   :  { %s151_s15 = smov 128   ;;  %s152_s16 = smov 8  }
   0xc   :  { %21 = dma.hbm_to_vmem [thread:$0]  %s198_s0, 256, %s16_s13, [#allocation3], %s151_s15, %s151_s15, %s152_s16  }
   0xd   :  { %146 = dma.done.wait [#allocation3], 256  }
   0xe   :  { %147 = vsyncadd [#allocation3], 4294967040  ;;  %vm31_vm0 = vcmask 261120   ;;  %v29_v0 = vld [vmem:[#allocation2] sm:$0xff]  ;;  %v30_v1 = vld [vmem:[#allocation2 + $0x8] sm:$0xff]  ;;  %s153_s22 = smov [#allocation5]  }
   0xf   :  { %v32_v2 = vsel %vm31_vm0, %v29_v0, 0.0  ;;  %v35_v3 = vsel %vm31_vm0, %v30_v1, 0.0  ;;  %v96_v21 = vld [vmem:[%s199_s1] ss:$0 sm:$0xff]  ;;  %s84_s23 = sshll.u32 %s153_s22, 4  ;;  %s85_s23 = int_to_ptr.vmem [resolvable:$true] %s84_s23 }
  0x10   :  { %33 = vadd.xlane.f32.xlu0 %v32_v2  ;;  %v97_v23 = vld [vmem:[%s200_s2] ss:$0 sm:$0xff]  ;;  %s126_s24 = scalar_lea.vmem %s85_s23, 256  ;;  %p131_p6 = scmp.lt.s32.totalorder %s85_s23, %s85_s23 }
  0x11   :  { %p127_p5 = scmp.ne.s32.totalorder %s85_s23, %s126_s24  ;;  %p132_p7 = scmp.lt.s32.totalorder %s126_s24, %s126_s24 }
  0x13   :  { %p133_p8 = por %p132_p7, %p131_p6 }
  0x14   :  { %36 = vadd.xlane.f32.xlu0 %v35_v3 }
  0x15   :  { %p134_p9 = pnand %p133_p8, %p127_p5 }
  0x99   :  { %v34_v4 = vpop.xlane.xlu0 %33 }
  0x9a   :  { %v39_v5 = vmul.f32 0.03125, %v34_v4 }
  0x9c   :  { %v41_v6 = vsub.f32 %v29_v0, %v39_v5 }
  0x9d   :  { %v37_v7 = vpop.xlane.xlu0 %36 }
  0x9e   :  { %v40_v8 = vmul.f32 0.03125, %v37_v7  ;;  %v43_v9 = vmul.f32 %v41_v6, %v41_v6 }
  0xa0   :  { %v42_v10 = vsub.f32 %v30_v1, %v40_v8  ;;  %v45_v11 = vsel %vm31_vm0, %v43_v9, 0.0 }
  0xa1   :  { %46 = vadd.xlane.f32.xlu1 %v45_v11 }
  0xa2   :  { %v44_v12 = vmul.f32 %v42_v10, %v42_v10 }
  0xa4   :  { %v48_v13 = vsel %vm31_vm0, %v44_v12, 0.0 }
  0xa5   :  { %49 = vadd.xlane.f32.xlu1 %v48_v13 }
 0x12a   :  { %v47_v14 = vpop.xlane.xlu1 %46 }
 0x12b   :  { %v51_v15 = vmul.f32 0.03125, %v47_v14 }
 0x12d   :  { %v53_v16 = vadd.f32 1e-12, %v51_v15 }
 0x12e   :  { %v50_v17 = vpop.xlane.xlu1 %49 }
 0x12f   :  { %102 = vrsqrt.f32 %v53_v16  ;;  %v52_v18 = vmul.f32 0.03125, %v50_v17 }
 0x131   :  { %v54_v19 = vadd.f32 1e-12, %v52_v18 }
 0x133   :  { %104 = vrsqrt.f32 %v54_v19 }
 0x13c   :  { %v103_v20 = vpop.eup %102 }
 0x13d   :  { %v57_v22 = vmul.f32 %v103_v20, %v41_v6 }
 0x13f   :  { %v66_v24 = vmul.f32 %v96_v21, %v57_v22 }
 0x140   :  { %v105_v25 = vpop.eup %104 }
 0x141   :  { %v58_v26 = vmul.f32 %v105_v25, %v42_v10  ;;  %v75_v27 = vadd.f32 %v97_v23, %v66_v24 }
 0x143   :  { %v67_v28 = vmul.f32 %v96_v21, %v58_v26  ;;  %77 = vst.msk [vmem:[#allocation5] sm:$0xff] %vm31_vm0, %v75_v27 }
 0x145   :  { %v76_v29 = vadd.f32 %v97_v23, %v67_v28 }
 0x147   :  { %78 = vst.msk [vmem:[#allocation5 + $0x8] sm:$0xff] %vm31_vm0, %v76_v29 }
 0x148   :  { %137 = shalt.err (!%p134_p9)
}
 0x149   :  { %90 = dma.vmem_to_hbm [thread:$0]  %s85_s23, 256, %s201_s3, [#allocation4], %s151_s15, %s151_s15, %s152_s16  }
 0x14a   :  { %148 = dma.done.wait [#allocation4], 256  }
 0x14b   :  { %149 = vsyncadd [#allocation4], 4294967040 }
 0x14c   :  { %94 = vsyncpa [#allocation3], 1 }
 0x14d   :  { %95 = vsyncpa [#allocation4], 1 }

</bundles_post_ra>
